<compile_context>
chip_gen: v7x
topology: tpu7x:2x2x1
jax: 0.10.0
libtpu: 0.0.40
codegen_flags: <defaults>
</compile_context>

<pallas_src>
import jax
import jax.numpy as jnp
from jax.experimental import pallas as pl
from jax.experimental.pallas import tpu as pltpu


def _round_up(v, m):
    return (v + m - 1) // m * m


# ----------------------------- kernel body ---------------------------------

def _ensemble_head_kernel(x_ref, w1_ref, b1_ref, w2_ref, b2_ref, out_ref):
    # x_ref  : (tb, Fp)    compute dtype, K zero-padded to a multiple of 128
    # w1_ref : (Fp, EHp)   per-member W1 packed along N, zero-padded
    # b1_ref : (1, EHp)    packed b1, f32, zero-padded
    # w2_ref : (EHp, Np)   block-diagonal per-member W2, zero off-diagonal/pad
    # b2_ref : (1, Np)     packed b2, f32, zero-padded
    # out_ref: (tb, Np)    lane-dense (Np multiple of 128)
    h = jnp.dot(x_ref[...], w1_ref[...], preferred_element_type=jnp.float32)
    h = h + b1_ref[...]                                   # f32 bias add (VPU, free under MXU slack)
    h = jnp.maximum(h, 0.0).astype(w2_ref.dtype)          # ReLU, back to MXU dtype
    y = jnp.dot(h, w2_ref[...], preferred_element_type=jnp.float32) + b2_ref[...]
    out_ref[...] = y.astype(out_ref.dtype)


# --------------------------- one-time packing -------------------------------

def pack_ensemble_params(w1, b1, w2, b2, *, compute_dtype=jnp.bfloat16):
    """Pack per-member weights once (hoist out of the per-call path).

    w1: (E, F, H); b1: (E, H); w2: (E, H, T); b2: (E, T)
    Returns a dict of packed device arrays + metadata, to be reused across
    every forward call.
    """
    E, F, H = w1.shape
    T = w2.shape[-1]
    EH, ET = E * H, E * T
    Fp = _round_up(max(F, 1), 128)     # K of first matmul, lane/sublane aligned
    EHp = _round_up(max(EH, 1), 128)   # N of first matmul / K of second
    Np = _round_up(max(ET, 1), 128)    # lane-dense packed output width (exactly one 128 round-up)
    cd = compute_dtype

    # W1 packed along N: member e occupies columns [e*H, (e+1)*H).
    w1_pack = jnp.transpose(w1, (1, 0, 2)).reshape(F, EH)
    w1_pack = jnp.pad(w1_pack, ((0, Fp - F), (0, EHp - EH))).astype(cd)
    b1_pack = jnp.pad(b1.reshape(1, EH).astype(jnp.float32), ((0, 0), (0, EHp - EH)))

    # Block-diagonal W2: member e's (H, T) block at rows [e*H, ...), cols [e*T, ...).
    # TODO(synk): for large ensembles (E*T >> 128) this block-diagonal matrix wastes
    # O(E) DMA bytes / MXU passes on zeros; switch to a per-member (grid-over-E)
    # second layer in that regime.
    eye = jnp.eye(E, dtype=w2.dtype)
    w2_bd = jnp.einsum("eht,eg->ehgt", w2, eye).reshape(EH, ET)
    w2_bd = jnp.pad(w2_bd, ((0, EHp - EH), (0, Np - ET))).astype(cd)
    b2_pack = jnp.pad(b2.reshape(1, ET).astype(jnp.float32), ((0, 0), (0, Np - ET)))

    meta = dict(E=E, F=F, H=H, T=T, EH=EH, ET=ET, Fp=Fp, EHp=EHp, Np=Np,
                compute_dtype=cd)
    return dict(w1=w1_pack, b1=b1_pack, w2=w2_bd, b2=b2_pack, meta=meta)


# -------------------- VMEM-aware tile / budget selection --------------------

_VMEM_BUDGET_BYTES = {"v5e": 64 << 20, "v6e": 96 << 20, "v7x": 48 << 20, "unknown": 32 << 20}
_BLOCK_B_CEILING = {"v5e": 512, "v6e": 2048, "v7x": 512, "unknown": 512}


def _tpu_generation():
    try:
        kind = jax.devices()[0].device_kind.lower()
    except Exception:
        return "unknown", 1
    if "v5" in kind:
        return "v5e", 1
    if "v6" in kind:
        return "v6e", 1
    if "v7" in kind or "7x" in kind:
        return "v7x", 2          # 2 TensorCores per chip
    return "unknown", 1


def _select_block_b(B, Fp, EHp, Np, cd_bytes, out_bytes, requested):
    gen, num_cores = _tpu_generation()
    budget = _VMEM_BUDGET_BYTES[gen]
    ceiling = _BLOCK_B_CEILING[gen]

    # VMEM accounting: weights counted once (single-buffered, constant index_map),
    # x/out double-buffered by the pipeline, plus the in-kernel f32 h intermediate
    # and its compute-dtype copy (the dominant term for large EH).
    weight_bytes = (Fp * EHp + EHp * Np) * cd_bytes + (EHp + Np) * 4
    per_row_bytes = (2 * Fp * cd_bytes       # x tile (double-buffered)
                     + 2 * Np * out_bytes    # out tile (double-buffered)
                     + EHp * (4 + cd_bytes)  # f32 h + relu(h) cast copy
                     + Np * 4)               # f32 y before output cast
    avail = budget - weight_bytes - (4 << 20)          # headroom for compiler scratch
    fit = max(8, int(avail // per_row_bytes) // 8 * 8) if avail > 8 * per_row_bytes else 8

    if requested is not None:
        blk = int(requested)
        if blk < B and blk % 8:
            blk = _round_up(blk, 8)
        blk = min(blk, B)
    else:
        blk = min(ceiling, fit)
        # v7x: >= 2 balanced tiles so both TensorCores get work on the "parallel" axis.
        if num_cores > 1 and B >= 8 * num_cores:
            blk = min(blk, _round_up(pl.cdiv(B, num_cores), 8))
        if blk >= B:
            blk = B
    return max(1, blk), gen, budget


# ------------------------------- forward ------------------------------------

def _run_packed_head(x_p, w1_p, b1_p, w2_p, b2_p, *, block_b, Fp, EHp, Np,
                     out_dtype, vmem_limit_bytes, single_buffer_weights):
    B = x_p.shape[0]
    num_b = pl.cdiv(B, block_b)

    w_kwargs = {}
    if single_buffer_weights:
        # Constant index_map across the grid -> a second pipeline buffer is pure VMEM waste.
        w_kwargs = dict(pipeline_mode=pl.Buffered(1))

    flops = 2 * B * (Fp * EHp + EHp * Np)
    bytes_accessed = (x_p.size * x_p.dtype.itemsize
                      + w1_p.size * w1_p.dtype.itemsize
                      + w2_p.size * w2_p.dtype.itemsize
                      + (b1_p.size + b2_p.size) * 4
                      + B * Np * jnp.dtype(out_dtype).itemsize)

    return pl.pallas_call(
        _ensemble_head_kernel,
        out_shape=jax.ShapeDtypeStruct((B, Np), out_dtype),
        grid=(num_b,),
        in_specs=[
            pl.BlockSpec((block_b, Fp), lambda i: (i, 0)),               # x tile (varies with b)
            pl.BlockSpec((Fp, EHp), lambda i: (0, 0), **w_kwargs),       # packed W1 (resident)
            pl.BlockSpec((1, EHp), lambda i: (0, 0), **w_kwargs),        # packed b1 (resident)
            pl.BlockSpec((EHp, Np), lambda i: (0, 0), **w_kwargs),       # block-diag W2 (resident)
            pl.BlockSpec((1, Np), lambda i: (0, 0), **w_kwargs),         # packed b2 (resident)
        ],
        out_specs=pl.BlockSpec((block_b, Np), lambda i: (i, 0)),
        compiler_params=pltpu.CompilerParams(
            dimension_semantics=("parallel",),
            vmem_limit_bytes=int(vmem_limit_bytes),
        ),
        cost_estimate=pl.CostEstimate(
            flops=int(flops), transcendentals=0, bytes_accessed=int(bytes_accessed)),
    )(x_p, w1_p, b1_p, w2_p, b2_p)


def ensemble_attfp_forward_packed(x, packed, *, block_b=None,
                                  out_dtype=jnp.float32, return_packed=False):
    """x: (B, F); packed: result of pack_ensemble_params().

    Returns (E, B, T) == torch.stack([model(x) for model in models], dim=0),
    or the raw (B, Np) packed output when return_packed=True (member e's tasks
    live in columns [e*T, (e+1)*T)), which skips the post-kernel unpack pass.
    """
    meta = packed["meta"]
    B, F = x.shape
    assert F == meta["F"], (F, meta["F"])
    E, T, ET = meta["E"], meta["T"], meta["ET"]
    Fp, EHp, Np = meta["Fp"], meta["EHp"], meta["Np"]
    cd = meta["compute_dtype"]

    # Only per-call prep on x: fused zero-pad of K to Fp + cast to compute dtype.
    x_p = jnp.pad(x, ((0, 0), (0, Fp - F))).astype(cd)

    cd_bytes = jnp.dtype(cd).itemsize
    out_bytes = jnp.dtype(out_dtype).itemsize
    blk, _gen, vmem_budget = _select_block_b(B, Fp, EHp, Np, cd_bytes, out_bytes, block_b)

    try:
        y_packed = _run_packed_head(
            x_p, packed["w1"], packed["b1"], packed["w2"], packed["b2"],
            block_b=blk, Fp=Fp, EHp=EHp, Np=Np, out_dtype=out_dtype,
            vmem_limit_bytes=vmem_budget, single_buffer_weights=True)
    except Exception:
        # pl.Buffered(1) (single-buffered resident weights) not supported on this
        # jax/libtpu combination -> fall back to default double-buffering.
        y_packed = _run_packed_head(
            x_p, packed["w1"], packed["b1"], packed["w2"], packed["b2"],
            block_b=blk, Fp=Fp, EHp=EHp, Np=Np, out_dtype=out_dtype,
            vmem_limit_bytes=vmem_budget, single_buffer_weights=False)

    if return_packed:
        return y_packed
    y = y_packed[:, :ET].reshape(B, E, T)
    return jnp.transpose(y, (1, 0, 2))       # (E, B, T) == torch.stack(..., dim=0)


def ensemble_attfp_forward(x, w1, b1, w2, b2, *, compute_dtype=jnp.bfloat16, **kw):
    """Convenience wrapper (packs every call). Prefer pack_ensemble_params() +
    ensemble_attfp_forward_packed() so the packing is done once."""
    packed = pack_ensemble_params(w1, b1, w2, b2, compute_dtype=compute_dtype)
    return ensemble_attfp_forward_packed(x, packed, **kw)


# ------------------------------ reference -----------------------------------

def _reference(x, w1, b1, w2, b2, compute_dtype=jnp.float32):
    # Pure-JAX reference: torch.stack([model(x) for model in models], dim=0),
    # optionally emulating the kernel's bf16-input / f32-accumulate math.
    cd = compute_dtype
    xc = x.astype(cd)

    def one(wa, ba, wb, bb):
        h = jnp.dot(xc, wa.astype(cd), preferred_element_type=jnp.float32)
        h = h + ba.astype(jnp.float32)
        h = jnp.maximum(h, 0.0).astype(cd)
        return jnp.dot(h, wb.astype(cd), preferred_element_type=jnp.float32) \
            + bb.astype(jnp.float32)

    return jax.vmap(one)(w1, b1, w2, b2)


if __name__ == "__main__":
    key = jax.random.PRNGKey(0)
    E = 3      # number of ensemble members
    B = 8      # number of graphs (batch)
    F = 32     # graph feature dim
    H = 64     # hidden dim of predictor head
    T = 8      # number of prediction tasks

    kx, k1, k2, k3, k4 = jax.random.split(key, 5)
    x = jax.random.normal(kx, (B, F), dtype=jnp.float32)
    w1 = jax.random.normal(k1, (E, F, H), dtype=jnp.float32) * 0.1
    b1 = jax.random.normal(k2, (E, H), dtype=jnp.float32) * 0.1
    w2 = jax.random.normal(k3, (E, H, T), dtype=jnp.float32) * 0.1
    b2 = jax.random.normal(k4, (E, T), dtype=jnp.float32) * 0.1

    packed = pack_ensemble_params(w1, b1, w2, b2)            # hoisted: packed ONCE
    out = ensemble_attfp_forward_packed(x, packed)           # bf16 compute, f32 accumulate
    out = jax.block_until_ready(out)
    assert out.shape == (E, B, T)

    ref_same_prec = _reference(x, w1, b1, w2, b2, compute_dtype=jnp.bfloat16)
    ref_f32 = _reference(x, w1, b1, w2, b2, compute_dtype=jnp.float32)
    assert jnp.allclose(out, ref_same_prec, atol=5e-3, rtol=5e-3), \
        float(jnp.max(jnp.abs(out - ref_same_prec)))
    assert jnp.allclose(out, ref_f32, atol=1e-1, rtol=1e-1), \
        float(jnp.max(jnp.abs(out - ref_f32)))

    # TODO(synk): the real AttentiveFP sub-models contain DGL message-passing
    # (graph conv / GRU readout); only the dense predictor-head + ensemble
    # stacking hot path is implemented here.
    print("KERNEL_OK")
</pallas_src>

<mosaic_0001>
module attributes {stable_mosaic.version = 11 : i64} {
  func.func @_ensemble_head_kernel(%arg0: i32, %arg1: memref<8x128xbf16, #tpu.memory_space<vmem>>, %arg2: memref<128x256xbf16, #tpu.memory_space<vmem>>, %arg3: memref<1x256xf32, #tpu.memory_space<vmem>>, %arg4: memref<256x128xbf16, #tpu.memory_space<vmem>>, %arg5: memref<1x128xf32, #tpu.memory_space<vmem>>, %arg6: memref<8x128xf32, #tpu.memory_space<vmem>>) attributes {dimension_semantics = [#tpu.dimension_semantics<parallel>], iteration_bounds = array<i64: 1>, scalar_prefetch = 0 : i64, scratch_operands = 0 : i64, tpu.core_type = #tpu.core_type<tc>, window_params = [{transform_indices = @transform_0, window_bounds = array<i64: 8, 128>}, {pipeline_mode = #tpu.pipeline_mode<synchronous>, transform_indices = @transform_1, window_bounds = array<i64: 128, 256>}, {pipeline_mode = #tpu.pipeline_mode<synchronous>, transform_indices = @transform_2, window_bounds = array<i64: 1, 256>}, {pipeline_mode = #tpu.pipeline_mode<synchronous>, transform_indices = @transform_3, window_bounds = array<i64: 256, 128>}, {pipeline_mode = #tpu.pipeline_mode<synchronous>, transform_indices = @transform_4, window_bounds = array<i64: 1, 128>}, {transform_indices = @transform_5, window_bounds = array<i64: 8, 128>}]} {
    %c0 = arith.constant 0 : index
    %c0_0 = arith.constant 0 : index
    %0 = vector.load %arg1[%c0, %c0_0] : memref<8x128xbf16, #tpu.memory_space<vmem>>, vector<8x128xbf16>
    %c0_1 = arith.constant 0 : index
    %c0_2 = arith.constant 0 : index
    %1 = vector.load %arg2[%c0_1, %c0_2] : memref<128x256xbf16, #tpu.memory_space<vmem>>, vector<128x256xbf16>
    %cst = arith.constant dense<0.000000e+00> : vector<8x256xf32>
    %2 = tpu.matmul %0, %1, %cst {dimension_numbers = #tpu.dot_dimension_numbers<[1], [0], [0], [1], [0, 0, 1, 1], [], []>} : vector<8x128xbf16>, vector<128x256xbf16>, vector<8x256xf32> -> vector<8x256xf32>
    %c0_3 = arith.constant 0 : index
    %c0_4 = arith.constant 0 : index
    %3 = vector.load %arg3[%c0_3, %c0_4] : memref<1x256xf32, #tpu.memory_space<vmem>>, vector<1x256xf32>
    %4 = vector.broadcast %3 : vector<1x256xf32> to vector<8x256xf32>
    %5 = arith.addf %2, %4 : vector<8x256xf32>
    %cst_5 = arith.constant 0.000000e+00 : f32
    %6 = vector.broadcast %cst_5 : f32 to vector<8x256xf32>
    %7 = arith.maximumf %5, %6 : vector<8x256xf32>
    %8 = arith.truncf %7 : vector<8x256xf32> to vector<8x256xbf16>
    %c0_6 = arith.constant 0 : index
    %c0_7 = arith.constant 0 : index
    %9 = vector.load %arg4[%c0_6, %c0_7] : memref<256x128xbf16, #tpu.memory_space<vmem>>, vector<256x128xbf16>
    %cst_8 = arith.constant dense<0.000000e+00> : vector<8x128xf32>
    %10 = tpu.matmul %8, %9, %cst_8 {dimension_numbers = #tpu.dot_dimension_numbers<[1], [0], [0], [1], [0, 0, 1, 1], [], []>} : vector<8x256xbf16>, vector<256x128xbf16>, vector<8x128xf32> -> vector<8x128xf32>
    %c0_9 = arith.constant 0 : index
    %c0_10 = arith.constant 0 : index
    %11 = vector.load %arg5[%c0_9, %c0_10] : memref<1x128xf32, #tpu.memory_space<vmem>>, vector<1x128xf32>
    %12 = vector.broadcast %11 : vector<1x128xf32> to vector<8x128xf32>
    %13 = arith.addf %10, %12 : vector<8x128xf32>
    %c0_11 = arith.constant 0 : index
    %c0_12 = arith.constant 0 : index
    %14 = vector.load %arg6[%c0_11, %c0_12] : memref<8x128xf32, #tpu.memory_space<vmem>>, vector<8x128xf32>
    tpu.vector_store %arg6[%c0_11, %c0_12], %13 {strides = array<i32>} : memref<8x128xf32, #tpu.memory_space<vmem>>, vector<8x128xf32>,
    return
  }
  func.func @transform_0(%arg0: i32) -> (i32, i32) {
    %c0_i32 = arith.constant 0 : i32
    %c0_i32_0 = arith.constant 0 : i32
    return %arg0, %c0_i32 : i32, i32
  }
  func.func @transform_1(%arg0: i32) -> (i32, i32) {
    %c0_i32 = arith.constant 0 : i32
    %c0_i32_0 = arith.constant 0 : i32
    %c0_i32_1 = arith.constant 0 : i32
    return %c0_i32, %c0_i32_0 : i32, i32
  }
  func.func @transform_2(%arg0: i32) -> (i32, i32) {
    %c0_i32 = arith.constant 0 : i32
    %c0_i32_0 = arith.constant 0 : i32
    %c0_i32_1 = arith.constant 0 : i32
    return %c0_i32, %c0_i32_0 : i32, i32
  }
  func.func @transform_3(%arg0: i32) -> (i32, i32) {
    %c0_i32 = arith.constant 0 : i32
    %c0_i32_0 = arith.constant 0 : i32
    %c0_i32_1 = arith.constant 0 : i32
    return %c0_i32, %c0_i32_0 : i32, i32
  }
  func.func @transform_4(%arg0: i32) -> (i32, i32) {
    %c0_i32 = arith.constant 0 : i32
    %c0_i32_0 = arith.constant 0 : i32
    %c0_i32_1 = arith.constant 0 : i32
    return %c0_i32, %c0_i32_0 : i32, i32
  }
  func.func @transform_5(%arg0: i32) -> (i32, i32) {
    %c0_i32 = arith.constant 0 : i32
    %c0_i32_0 = arith.constant 0 : i32
    return %arg0, %c0_i32 : i32, i32
  }
}

module attributes {stable_mosaic.version = 11 : i64} {
  func.func @_ensemble_head_kernel(%arg0: i32, %arg1: memref<8x128xbf16, #tpu.memory_space<vmem>>, %arg2: memref<128x256xbf16, #tpu.memory_space<vmem>>, %arg3: memref<1x256xf32, #tpu.memory_space<vmem>>, %arg4: memref<256x128xbf16, #tpu.memory_space<vmem>>, %arg5: memref<1x128xf32, #tpu.memory_space<vmem>>, %arg6: memref<8x128xf32, #tpu.memory_space<vmem>>) attributes {dimension_semantics = [#tpu.dimension_semantics<parallel>], iteration_bounds = array<i64: 1>, scalar_prefetch = 0 : i64, scratch_operands = 0 : i64, tpu.core_type = #tpu.core_type<tc>, window_params = [{transform_indices = @transform_0, window_bounds = array<i64: 8, 128>}, {pipeline_mode = #tpu.pipeline_mode<synchronous>, transform_indices = @transform_1, window_bounds = array<i64: 128, 256>}, {pipeline_mode = #tpu.pipeline_mode<synchronous>, transform_indices = @transform_2, window_bounds = array<i64: 1, 256>}, {pipeline_mode = #tpu.pipeline_mode<synchronous>, transform_indices = @transform_3, window_bounds = array<i64: 256, 128>}, {pipeline_mode = #tpu.pipeline_mode<synchronous>, transform_indices = @transform_4, window_bounds = array<i64: 1, 128>}, {transform_indices = @transform_5, window_bounds = array<i64: 8, 128>}]} {
    %c0 = arith.constant 0 : index
    %c0_0 = arith.constant 0 : index
    %0 = vector.load %arg1[%c0, %c0_0] : memref<8x128xbf16, #tpu.memory_space<vmem>>, vector<8x128xbf16>
    %c0_1 = arith.constant 0 : index
    %c0_2 = arith.constant 0 : index
    %1 = vector.load %arg2[%c0_1, %c0_2] : memref<128x256xbf16, #tpu.memory_space<vmem>>, vector<128x256xbf16>
    %cst = arith.constant dense<0.000000e+00> : vector<8x256xf32>
    %2 = tpu.matmul %0, %1, %cst {dimension_numbers = #tpu.dot_dimension_numbers<[1], [0], [0], [1], [0, 0, 1, 1], [], []>} : vector<8x128xbf16>, vector<128x256xbf16>, vector<8x256xf32> -> vector<8x256xf32>
    %c0_3 = arith.constant 0 : index
    %c0_4 = arith.constant 0 : index
    %3 = vector.load %arg3[%c0_3, %c0_4] : memref<1x256xf32, #tpu.memory_space<vmem>>, vector<1x256xf32>
    %4 = vector.broadcast %3 : vector<1x256xf32> to vector<8x256xf32>
    %5 = arith.addf %2, %4 : vector<8x256xf32>
    %cst_5 = arith.constant 0.000000e+00 : f32
    %6 = vector.broadcast %cst_5 : f32 to vector<8x256xf32>
    %7 = arith.maximumf %5, %6 : vector<8x256xf32>
    %8 = arith.truncf %7 : vector<8x256xf32> to vector<8x256xbf16>
    %c0_6 = arith.constant 0 : index
    %c0_7 = arith.constant 0 : index
    %9 = vector.load %arg4[%c0_6, %c0_7] : memref<256x128xbf16, #tpu.memory_space<vmem>>, vector<256x128xbf16>
    %cst_8 = arith.constant dense<0.000000e+00> : vector<8x128xf32>
    %10 = tpu.matmul %8, %9, %cst_8 {dimension_numbers = #tpu.dot_dimension_numbers<[1], [0], [0], [1], [0, 0, 1, 1], [], []>} : vector<8x256xbf16>, vector<256x128xbf16>, vector<8x128xf32> -> vector<8x128xf32>
    %c0_9 = arith.constant 0 : index
    %c0_10 = arith.constant 0 : index
    %11 = vector.load %arg5[%c0_9, %c0_10] : memref<1x128xf32, #tpu.memory_space<vmem>>, vector<1x128xf32>
    %12 = vector.broadcast %11 : vector<1x128xf32> to vector<8x128xf32>
    %13 = arith.addf %10, %12 : vector<8x128xf32>
    %c0_11 = arith.constant 0 : index
    %c0_12 = arith.constant 0 : index
    %14 = vector.load %arg6[%c0_11, %c0_12] : memref<8x128xf32, #tpu.memory_space<vmem>>, vector<8x128xf32>
    tpu.vector_store %arg6[%c0_11, %c0_12], %13 {strides = array<i32>} : memref<8x128xf32, #tpu.memory_space<vmem>>, vector<8x128xf32>,
    return
  }
  func.func @transform_0(%arg0: i32) -> (i32, i32) {
    %c0_i32 = arith.constant 0 : i32
    %c0_i32_0 = arith.constant 0 : i32
    return %arg0, %c0_i32 : i32, i32
  }
  func.func @transform_1(%arg0: i32) -> (i32, i32) {
    %c0_i32 = arith.constant 0 : i32
    %c0_i32_0 = arith.constant 0 : i32
    %c0_i32_1 = arith.constant 0 : i32
    return %c0_i32, %c0_i32_0 : i32, i32
  }
  func.func @transform_2(%arg0: i32) -> (i32, i32) {
    %c0_i32 = arith.constant 0 : i32
    %c0_i32_0 = arith.constant 0 : i32
    %c0_i32_1 = arith.constant 0 : i32
    return %c0_i32, %c0_i32_0 : i32, i32
  }
  func.func @transform_3(%arg0: i32) -> (i32, i32) {
    %c0_i32 = arith.constant 0 : i32
    %c0_i32_0 = arith.constant 0 : i32
    %c0_i32_1 = arith.constant 0 : i32
    return %c0_i32, %c0_i32_0 : i32, i32
  }
  func.func @transform_4(%arg0: i32) -> (i32, i32) {
    %c0_i32 = arith.constant 0 : i32
    %c0_i32_0 = arith.constant 0 : i32
    %c0_i32_1 = arith.constant 0 : i32
    return %c0_i32, %c0_i32_0 : i32, i32
  }
  func.func @transform_5(%arg0: i32) -> (i32, i32) {
    %c0_i32 = arith.constant 0 : i32
    %c0_i32_0 = arith.constant 0 : i32
    return %arg0, %c0_i32 : i32, i32
  }
}

</mosaic_0001>

<bundles_post_ra>
// kernel: tpu_custom_call.1
= control target key start
LH: loop header
LB: loop body
LE: loop exit
PB: predicated region body
PF: predicated region fallthrough
CT: control target
= control target key end

     0   :  { %10 = vsyncpa [#allocation3], 0  ;;  %s698_s0 = inlined_call_operand.hbm [shape: bf16[8,128], index: 0, kind: input, shape index: {}]   ;;  %s699_s1 = inlined_call_operand.hbm [shape: bf16[128,256], index: 1, kind: input, shape index: {}]   ;;  %s700_s2 = inlined_call_operand.vmem [shape: f32[1,256], index: 2, kind: input, shape index: {}]   ;;  %s701_s3 = inlined_call_operand.hbm [shape: bf16[256,128], index: 3, kind: input, shape index: {}]   ;;  %s702_s4 = inlined_call_operand.vmem [shape: f32[1,128], index: 4, kind: input, shape index: {}]   ;;  %s703_s5 = inlined_call_operand.hbm [shape: f32[8,128], index: 5, kind: output, shape index: {}]  }
   0x1   :  { %11 = vsyncpa [#allocation6], 0 }
   0x2   :  { %12 = vsyncpa [#allocation4], 0  ;;  %s605_s18 = smov [#allocation5]   ;;  %s511_s22 = scalar_lea.hbm %s699_s1, 2048 }
   0x3   :  { %s28_s19 = sshll.u32 %s605_s18, 4  ;;  %p512_p0 = scmp.ne.s32.totalorder %s699_s1, %s511_s22  ;;  %s29_s19 = int_to_ptr.vmem [resolvable:$true] %s28_s19 }
   0x4   :  { %p515_p1 = scmp.lt.u32.totalorder %s511_s22, %s699_s1 }
   0x6   :  { %p517_p2 = pnand %p515_p1, %p512_p0 }
   0x8   :  { %520 = shalt.err (!%p517_p2)
}
   0x9   :  { %s521_s27 = scalar_lea.vmem %s29_s19, 2048  ;;  %p526_p4 = scmp.lt.s32.totalorder %s29_s19, %s29_s19 }
   0xa   :  { %p522_p3 = scmp.ne.s32.totalorder %s29_s19, %s521_s27  ;;  %p527_p5 = scmp.lt.s32.totalorder %s521_s27, %s521_s27 }
   0xc   :  { %p528_p6 = por %p527_p5, %p526_p4 }
   0xe   :  { %p529_p7 = pnand %p528_p6, %p522_p3 }
  0x10   :  { %532 = shalt.err (!%p529_p7)
}
  0x11   :  { %s606_s28 = smov 128   ;;  %s607_s29 = smov 8  }
  0x12   :  { %34 = dma.hbm_to_vmem [thread:$0]  %s699_s1, 2048, %s29_s19, [#allocation6], %s606_s28, %s606_s28, %s607_s29  }
  0x13   :  { %s608_s7 = smov [#allocation2]   ;;  %s609_s9 = smov [#allocation7]  }
  0x14   :  { %s19_s8 = sshll.u32 %s608_s7, 4  ;;  %s42_s10 = sshll.u32 %s609_s9, 4  ;;  %s20_s8 = int_to_ptr.vmem [resolvable:$true] %s19_s8  ;;  %s43_s10 = int_to_ptr.vmem [resolvable:$true] %s42_s10 }
  0x15   :  { %s533_s13 = scalar_lea.hbm %s698_s0, 64 }
  0x16   :  { %p534_p8 = scmp.ne.s32.totalorder %s698_s0, %s533_s13  ;;  %p537_p9 = scmp.lt.u32.totalorder %s533_s13, %s698_s0 }
  0x18   :  { %p539_p10 = pnand %p537_p9, %p534_p8 }
  0x1a   :  { %542 = shalt.err (!%p539_p10)
}
  0x1b   :  { %s543_s1 = scalar_lea.vmem %s20_s8, 64  ;;  %p548_p12 = scmp.lt.s32.totalorder %s20_s8, %s20_s8 }
  0x1c   :  { %p544_p11 = scmp.ne.s32.totalorder %s20_s8, %s543_s1  ;;  %p549_p13 = scmp.lt.s32.totalorder %s543_s1, %s543_s1 }
  0x1e   :  { %p550_p0 = por %p549_p13, %p548_p12 }
  0x20   :  { %p551_p1 = pnand %p550_p0, %p544_p11 }
  0x22   :  { %554 = shalt.err (!%p551_p1)
}
  0x23   :  { %22 = dma.hbm_to_vmem [thread:$0]  %s698_s0, 64, %s20_s8, [#allocation3]  }
  0x24   :  { %s555_s22 = scalar_lea.hbm %s701_s3, 2048 }
  0x25   :  { %p556_p2 = scmp.ne.s32.totalorder %s701_s3, %s555_s22  ;;  %p559_p3 = scmp.lt.u32.totalorder %s555_s22, %s701_s3 }
  0x27   :  { %p561_p4 = pnand %p559_p3, %p556_p2 }
  0x29   :  { %564 = shalt.err (!%p561_p4)
}
  0x2a   :  { %s565_s27 = scalar_lea.vmem %s43_s10, 2048  ;;  %p570_p6 = scmp.lt.s32.totalorder %s43_s10, %s43_s10 }
  0x2b   :  { %p566_p5 = scmp.ne.s32.totalorder %s43_s10, %s565_s27  ;;  %p571_p7 = scmp.lt.s32.totalorder %s565_s27, %s565_s27 }
  0x2d   :  { %p572_p8 = por %p571_p7, %p570_p6 }
  0x2f   :  { %p573_p9 = pnand %p572_p8, %p566_p5 }
  0x31   :  { %576 = shalt.err (!%p573_p9)
}
  0x32   :  { %s610_s0 = smov 64   ;;  %s611_s28 = smov 4  }
  0x33   :  { %48 = dma.hbm_to_vmem [thread:$0]  %s701_s3, 2048, %s43_s10, [#allocation6], %s610_s0, %s610_s0, %s611_s28  }
  0x34   :  { %599 = dma.done.wait [#allocation3], 64  }
  0x35   :  { %600 = vsyncadd [#allocation3], 4294967232 }
  0x36   :  { %601 = dma.done.wait [#allocation6], 4096  }
  0x37   :  { %602 = vsyncadd [#allocation6], 4294963200  ;;  %v612_v0 = vmov 0   ;;  %v471_v1 = vld [vmem:[#allocation5 + $0x4] ss:$8 sps:$4 sm:$0xff]   ;;  %v499_v15 = vld [vmem:[#allocation7 + $0x50] sm:$0xff]   ;;  %v80_v34 = vlaneseq }
  0x38   :  { %202 = vmatprep.mubr.bf16.mxu0 %v612_v0  ;;  %v473_v2 = vld [vmem:[#allocation5] ss:$8 sps:$4 sm:$0xff]   ;;  %170 = vmatprep.subr.bf16.mxu0 %v471_v1  ;;  %v474_v3 = vld [vmem:[#allocation5 + $0x14] ss:$8 sps:$4 sm:$0xff]   ;;  %v476_v4 = vld [vmem:[#allocation5 + $0x10] ss:$8 sps:$4 sm:$0xff]  }
  0x39   :  { %171 = vmatpush1.bf16.msra.mxu0 %v473_v2  ;;  %v477_v5 = vld [vmem:[#allocation5 + $0x24] ss:$8 sps:$4 sm:$0xff]   ;;  %v479_v6 = vld [vmem:[#allocation5 + $0x20] ss:$8 sps:$4 sm:$0xff]   ;;  %v480_v7 = vld [vmem:[#allocation5 + $0x34] ss:$8 sps:$4 sm:$0xff]  }
  0x3a   :  { %172 = vmatprep.subr.bf16.mxu0 %v474_v3  ;;  %v482_v8 = vld [vmem:[#allocation5 + $0x30] ss:$8 sps:$4 sm:$0xff]   ;;  %v483_v9 = vld [vmem:[#allocation5 + $0x44] ss:$8 sps:$4 sm:$0xff]   ;;  %v485_v12 = vld [vmem:[#allocation5 + $0x40] ss:$8 sps:$4 sm:$0xff]  }
  0x3b   :  { %v495_v10 = vld [vmem:[#allocation7 + $0x40] sm:$0xff]   ;;  %v497_v13 = vld [vmem:[#allocation7 + $0x48] sm:$0xff]   ;;  %v486_v16 = vld [vmem:[#allocation5 + $0x54] ss:$8 sps:$4 sm:$0xff]   ;;  %v81_v35 = vshrl.u32 %v80_v34, 7 }
  0x3c   :  { %v496_v11 = vld [vmem:[#allocation7] sm:$0xff]   ;;  %440 = vmatprep.subr.bf16.mxu1 %v495_v10  ;;  %v498_v14 = vld [vmem:[#allocation7 + $0x8] sm:$0xff]   ;;  %v488_v17 = vld [vmem:[#allocation5 + $0x50] ss:$8 sps:$4 sm:$0xff]  }
  0x3d   :  { %173 = vmatpush1.bf16.msra.mxu0 %v476_v4  ;;  %441 = vmatpush3.bf16.msra.mxu1 %v496_v11  ;;  %v500_v18 = vld [vmem:[#allocation7 + $0x10] sm:$0xff]   ;;  %v501_v19 = vld [vmem:[#allocation7 + $0x58] sm:$0xff]   ;;  %v489_v20 = vld [vmem:[#allocation5 + $0x64] ss:$8 sps:$4 sm:$0xff]   ;;  %v82_v36 = vsub.s32 0, %v81_v35  ;;  %v86_v38 = vsub.s32 1, %v81_v35 }
  0x3e   :  { %174 = vmatprep.subr.bf16.mxu0 %v477_v5  ;;  %442 = vmatprep.subr.bf16.mxu1 %v497_v13  ;;  %v491_v21 = vld [vmem:[#allocation5 + $0x60] ss:$8 sps:$4 sm:$0xff]   ;;  %v492_v22 = vld [vmem:[#allocation5 + $0x74] ss:$8 sps:$4 sm:$0xff]   ;;  %v494_v26 = vld [vmem:[#allocation5 + $0x70] ss:$8 sps:$4 sm:$0xff]  }
  0x3f   :  { %v502_v23 = vld [vmem:[#allocation7 + $0x18] sm:$0xff]   ;;  %v503_v24 = vld [vmem:[#allocation7 + $0x60] sm:$0xff]   ;;  %v505_v27 = vld [vmem:[#allocation7 + $0x68] sm:$0xff]  }
  0x40   :  { %v504_v25 = vld [vmem:[#allocation7 + $0x20] sm:$0xff]   ;;  %v506_v28 = vld [vmem:[#allocation7 + $0x28] sm:$0xff]   ;;  %v61_v29 = vld [vmem:[#allocation2] sm:$0xf] }
  0x41   :  { %175 = vmatpush1.bf16.msra.mxu0 %v479_v6  ;;  %443 = vmatpush3.bf16.msra.mxu1 %v498_v14  ;;  %v507_v30 = vld [vmem:[#allocation7 + $0x70] sm:$0xff]   ;;  %v509_v32 = vld [vmem:[#allocation7 + $0x78] sm:$0xff]  }
  0x42   :  { %176 = vmatprep.subr.bf16.mxu0 %v480_v7  ;;  %444 = vmatprep.subr.bf16.mxu1 %v499_v15  ;;  %v508_v31 = vld [vmem:[#allocation7 + $0x30] sm:$0xff]   ;;  %v510_v33 = vld [vmem:[#allocation7 + $0x38] sm:$0xff]  }
  0x43   :  { %v78_v37 = vld [vmem:[%s700_s2] sm:$0x3]  ;;  %s613_s2 = smov [#allocation8]  }
  0x44   :  { %v83_v39 = vrot.slane %v78_v37, %v82_v36  ;;  %v87_v40 = vrot.slane %v78_v37, %v86_v38  ;;  %v423_v52 = vld [vmem:[%s702_s4] ss:$0 sm:$0xff]  ;;  %s397_s9 = sshll.u32 %s613_s2, 4  ;;  %s398_s9 = int_to_ptr.vmem [resolvable:$true] %s397_s9 }
  0x45   :  { %177 = vmatpush1.bf16.msra.mxu0 %v482_v8  ;;  %445 = vmatpush3.bf16.msra.mxu1 %v500_v18  ;;  %s577_s10 = scalar_lea.vmem %s398_s9, 128  ;;  %p582_p11 = scmp.lt.s32.totalorder %s398_s9, %s398_s9 }
  0x46   :  { %178 = vmatprep.subr.bf16.mxu0 %v483_v9  ;;  %446 = vmatprep.subr.bf16.mxu1 %v501_v19  ;;  %p578_p10 = scmp.ne.s32.totalorder %s398_s9, %s577_s10  ;;  %p583_p12 = scmp.lt.s32.totalorder %s577_s10, %s577_s10 }
  0x48   :  { %p584_p13 = por %p583_p12, %p582_p11 }
  0x49   :  { %179 = vmatpush1.bf16.msra.mxu0 %v485_v12  ;;  %447 = vmatpush3.bf16.msra.mxu1 %v502_v23 }
  0x4a   :  { %180 = vmatprep.subr.bf16.mxu0 %v486_v16  ;;  %448 = vmatprep.subr.bf16.mxu1 %v503_v24  ;;  %p585_p0 = pnand %p584_p13, %p578_p10 }
  0x4d   :  { %181 = vmatpush1.bf16.msra.mxu0 %v488_v17  ;;  %449 = vmatpush3.bf16.msra.mxu1 %v504_v25 }
  0x4e   :  { %182 = vmatprep.subr.bf16.mxu0 %v489_v20  ;;  %450 = vmatprep.subr.bf16.mxu1 %v505_v27 }
  0x51   :  { %183 = vmatpush1.bf16.msra.mxu0 %v491_v21  ;;  %451 = vmatpush3.bf16.msra.mxu1 %v506_v28 }
  0x52   :  { %184 = vmatprep.subr.bf16.mxu0 %v492_v22  ;;  %452 = vmatprep.subr.bf16.mxu1 %v507_v30 }
  0x55   :  { %185 = vmatpush1.bf16.msra.mxu0 %v494_v26  ;;  %453 = vmatpush3.bf16.msra.mxu1 %v508_v31 }
  0x56   :  { %454 = vmatprep.subr.bf16.mxu1 %v509_v32 }
  0x58   :  { %203 = vmatmul.mubr.bf16.vlgmr.msra.gmra.mrb[0].mxu0 %v61_v29 }
  0x59   :  { %455 = vmatpush3.bf16.msra.mxu1 %v510_v33 }
 0x12b   :  { %v204_v41 = vpop.f32.mrb[0].mxu0 }
 0x12c   :  { %v205_v42 = vadd.f32 %v204_v41, %v83_v39  ;;  %v206_v43 = vpop.f32.mrb[1].mxu0 }
 0x12d   :  { %v207_v44 = vadd.f32 %v206_v43, %v87_v40  ;;  %v208_v45 = vpop.f32.mrb[2].mxu0 }
 0x12e   :  { %v211_v46 = vmax.f32 %v205_v42, 0.0  ;;  %v209_v47 = vpop.f32.mrb[3].mxu0 }
 0x12f   :  { %v212_v48 = vmax.f32 %v207_v44, 0.0 }
 0x130   :  { %v213_v50 = vpack.c.bf16 %v211_v46, %v211_v46 }
 0x131   :  { %v214_v49 = vpack.c.bf16 %v212_v48, %v212_v48 }
 0x133   :  { %382 = vmatprep.mubr.bf16.mxu1 %v214_v49 }
 0x134   :  { %383 = vmatmul.mubr.bf16.vlgmr.msra.gmra.mrb[0].mxu1 %v213_v50 }
 0x207   :  { %v456_v51 = vpop.f32.mrb[0].mxu1 }
 0x208   :  { %v457_v53 = vpop.f32.mrb[1].mxu1 }
 0x209   :  { %v458_v54 = vadd.f32 %v457_v53, %v456_v51  ;;  %v459_v55 = vpop.f32.mrb[2].mxu1 }
 0x20a   :  { %v460_v56 = vpop.f32.mrb[3].mxu1 }
 0x20b   :  { %v385_v57 = vadd.f32 %v458_v54, %v423_v52 }
 0x20d   :  { %390 = vst [vmem:[#allocation8] sm:$0xff] %v385_v57 }
 0x20e   :  { %588 = shalt.err (!%p585_p0)
}
 0x20f   :  { %s589_s4 = scalar_lea.hbm %s703_s5, 128 }
 0x210   :  { %p590_p1 = scmp.ne.s32.totalorder %s703_s5, %s589_s4  ;;  %p593_p2 = scmp.lt.u32.totalorder %s589_s4, %s703_s5 }
 0x212   :  { %p595_p3 = pnand %p593_p2, %p590_p1 }
 0x214   :  { %598 = shalt.err (!%p595_p3)
}
 0x215   :  { %400 = dma.vmem_to_hbm [thread:$0]  %s398_s9, 128, %s703_s5, [#allocation4]  }
 0x216   :  { %603 = dma.done.wait [#allocation4], 128  }
 0x217   :  { %604 = vsyncadd [#allocation4], 4294967168 }
 0x218   :  { %404 = vsyncpa [#allocation3], 1 }
 0x219   :  { %405 = vsyncpa [#allocation6], 1 }
 0x21a   :  { %406 = vsyncpa [#allocation4], 1 }

// kernel: tpu_custom_call.1
= control target key start
LH: loop header
LB: loop body
LE: loop exit
PB: predicated region body
PF: predicated region fallthrough
CT: control target
= control target key end

     0   :  { %10 = vsyncpa [#allocation3], 0  ;;  %s698_s0 = inlined_call_operand.hbm [shape: bf16[8,128], index: 0, kind: input, shape index: {}]   ;;  %s699_s1 = inlined_call_operand.hbm [shape: bf16[128,256], index: 1, kind: input, shape index: {}]   ;;  %s700_s2 = inlined_call_operand.vmem [shape: f32[1,256], index: 2, kind: input, shape index: {}]   ;;  %s701_s3 = inlined_call_operand.hbm [shape: bf16[256,128], index: 3, kind: input, shape index: {}]   ;;  %s702_s4 = inlined_call_operand.vmem [shape: f32[1,128], index: 4, kind: input, shape index: {}]   ;;  %s703_s5 = inlined_call_operand.hbm [shape: f32[8,128], index: 5, kind: output, shape index: {}]  }
   0x1   :  { %11 = vsyncpa [#allocation6], 0 }
   0x2   :  { %12 = vsyncpa [#allocation4], 0  ;;  %s605_s18 = smov [#allocation5]   ;;  %s511_s22 = scalar_lea.hbm %s699_s1, 2048 }
   0x3   :  { %s28_s19 = sshll.u32 %s605_s18, 4  ;;  %p512_p0 = scmp.ne.s32.totalorder %s699_s1, %s511_s22  ;;  %s29_s19 = int_to_ptr.vmem [resolvable:$true] %s28_s19 }
   0x4   :  { %p515_p1 = scmp.lt.u32.totalorder %s511_s22, %s699_s1 }
   0x6   :  { %p517_p2 = pnand %p515_p1, %p512_p0 }
   0x8   :  { %520 = shalt.err (!%p517_p2)
}
   0x9   :  { %s521_s27 = scalar_lea.vmem %s29_s19, 2048  ;;  %p526_p4 = scmp.lt.s32.totalorder %s29_s19, %s29_s19 }
   0xa   :  { %p522_p3 = scmp.ne.s32.totalorder %s29_s19, %s521_s27  ;;  %p527_p5 = scmp.lt.s32.totalorder %s521_s27, %s521_s27 }
   0xc   :  { %p528_p6 = por %p527_p5, %p526_p4 }
   0xe   :  { %p529_p7 = pnand %p528_p6, %p522_p3 }
  0x10   :  { %532 = shalt.err (!%p529_p7)
}
  0x11   :  { %s606_s28 = smov 128   ;;  %s607_s29 = smov 8  }
  0x12   :  { %34 = dma.hbm_to_vmem [thread:$0]  %s699_s1, 2048, %s29_s19, [#allocation6], %s606_s28, %s606_s28, %s607_s29  }
  0x13   :  { %s608_s7 = smov [#allocation2]   ;;  %s609_s9 = smov [#allocation7]  }
  0x14   :  { %s19_s8 = sshll.u32 %s608_s7, 4  ;;  %s42_s10 = sshll.u32 %s609_s9, 4  ;;  %s20_s8 = int_to_ptr.vmem [resolvable:$true] %s19_s8  ;;  %s43_s10 = int_to_ptr.vmem [resolvable:$true] %s42_s10 }
  0x15   :  { %s533_s13 = scalar_lea.hbm %s698_s0, 64 }
  0x16   :  { %p534_p8 = scmp.ne.s32.totalorder %s698_s0, %s533_s13  ;;  %p537_p9 = scmp.lt.u32.totalorder %s533_s13, %s698_s0 }
  0x18   :  { %p539_p10 = pnand %p537_p9, %p534_p8 }
  0x1a   :  { %542 = shalt.err (!%p539_p10)
}
  0x1b   :  { %s543_s1 = scalar_lea.vmem %s20_s8, 64  ;;  %p548_p12 = scmp.lt.s32.totalorder %s20_s8, %s20_s8 }
  0x1c   :  { %p544_p11 = scmp.ne.s32.totalorder %s20_s8, %s543_s1  ;;  %p549_p13 = scmp.lt.s32.totalorder %s543_s1, %s543_s1 }
  0x1e   :  { %p550_p0 = por %p549_p13, %p548_p12 }
  0x20   :  { %p551_p1 = pnand %p550_p0, %p544_p11 }
  0x22   :  { %554 = shalt.err (!%p551_p1)
}
  0x23   :  { %22 = dma.hbm_to_vmem [thread:$0]  %s698_s0, 64, %s20_s8, [#allocation3]  }
  0x24   :  { %s555_s22 = scalar_lea.hbm %s701_s3, 2048 }
  0x25   :  { %p556_p2 = scmp.ne.s32.totalorder %s701_s3, %s555_s22  ;;  %p559_p3 = scmp.lt.u32.totalorder %s555_s22, %s701_s3 }
  0x27   :  { %p561_p4 = pnand %p559_p3, %p556_p2 }
  0x29   :  { %564 = shalt.err (!%p561_p4)
}
  0x2a   :  { %s565_s27 = scalar_lea.vmem %s43_s10, 2048  ;;  %p570_p6 = scmp.lt.s32.totalorder %s43_s10, %s43_s10 }
  0x2b   :  { %p566_p5 = scmp.ne.s32.totalorder %s43_s10, %s565_s27  ;;  %p571_p7 = scmp.lt.s32.totalorder %s565_s27, %s565_s27 }
  0x2d   :  { %p572_p8 = por %p571_p7, %p570_p6 }
  0x2f   :  { %p573_p9 = pnand %p572_p8, %p566_p5 }
  0x31   :  { %576 = shalt.err (!%p573_p9)
}
  0x32   :  { %s610_s0 = smov 64   ;;  %s611_s28 = smov 4  }
  0x33   :  { %48 = dma.hbm_to_vmem [thread:$0]  %s701_s3, 2048, %s43_s10, [#allocation6], %s610_s0, %s610_s0, %s611_s28  }
  0x34   :  { %599 = dma.done.wait [#allocation3], 64  }
  0x35   :  { %600 = vsyncadd [#allocation3], 4294967232 }
  0x36   :  { %601 = dma.done.wait [#allocation6], 4096  }
  0x37   :  { %602 = vsyncadd [#allocation6], 4294963200  ;;  %v612_v0 = vmov 0   ;;  %v471_v1 = vld [vmem:[#allocation5 + $0x4] ss:$8 sps:$4 sm:$0xff]   ;;  %v499_v15 = vld [vmem:[#allocation7 + $0x50] sm:$0xff]   ;;  %v80_v34 = vlaneseq }
  0x38   :  { %202 = vmatprep.mubr.bf16.mxu0 %v612_v0  ;;  %v473_v2 = vld [vmem:[#allocation5] ss:$8 sps:$4 sm:$0xff]   ;;  %170 = vmatprep.subr.bf16.mxu0 %v471_v1  ;;  %v474_v3 = vld [vmem:[#allocation5 + $0x14] ss:$8 sps:$4 sm:$0xff]   ;;  %v476_v4 = vld [vmem:[#allocation5 + $0x10] ss:$8 sps:$4 sm:$0xff]  }
  0x39   :  { %171 = vmatpush1.bf16.msra.mxu0 %v473_v2  ;;  %v477_v5 = vld [vmem:[#allocation5 + $0x24] ss:$8 sps:$4 sm:$0xff]   ;;  %v479_v6 = vld [vmem:[#allocation5 + $0x20] ss:$8 sps:$4 sm:$0xff]   ;;  %v480_v7 = vld [vmem:[#allocation5 + $0x34] ss:$8 sps:$4 sm:$0xff]  }
  0x3a   :  { %172 = vmatprep.subr.bf16.mxu0 %v474_v3  ;;  %v482_v8 = vld [vmem:[#allocation5 + $0x30] ss:$8 sps:$4 sm:$0xff]   ;;  %v483_v9 = vld [vmem:[#allocation5 + $0x44] ss:$8 sps:$4 sm:$0xff]   ;;  %v485_v12 = vld [vmem:[#allocation5 + $0x40] ss:$8 sps:$4 sm:$0xff]  }
  0x3b   :  { %v495_v10 = vld [vmem:[#allocation7 + $0x40] sm:$0xff]   ;;  %v497_v13 = vld [vmem:[#allocation7 + $0x48] sm:$0xff]   ;;  %v486_v16 = vld [vmem:[#allocation5 + $0x54] ss:$8 sps:$4 sm:$0xff]   ;;  %v81_v35 = vshrl.u32 %v80_v34, 7 }
  0x3c   :  { %v496_v11 = vld [vmem:[#allocation7] sm:$0xff]   ;;  %440 = vmatprep.subr.bf16.mxu1 %v495_v10  ;;  %v498_v14 = vld [vmem:[#allocation7 + $0x8] sm:$0xff]   ;;  %v488_v17 = vld [vmem:[#allocation5 + $0x50] ss:$8 sps:$4 sm:$0xff]  }
  0x3d   :  { %173 = vmatpush1.bf16.msra.mxu0 %v476_v4  ;;  %441 = vmatpush3.bf16.msra.mxu1 %v496_v11  ;;  %v500_v18 = vld [vmem:[#allocation7 + $0x10] sm:$0xff]   ;;  %v501_v19 = vld [vmem:[#allocation7 + $0x58] sm:$0xff]   ;;  %v489_v20 = vld [vmem:[#allocation5 + $0x64] ss:$8 sps:$4 sm:$0xff]   ;;  %v82_v36 = vsub.s32 0, %v81_v35  ;;  %v86_v38 = vsub.s32 1, %v81_v35 }
  0x3e   :  { %174 = vmatprep.subr.bf16.mxu0 %v477_v5  ;;  %442 = vmatprep.subr.bf16.mxu1 %v497_v13  ;;  %v491_v21 = vld [vmem:[#allocation5 + $0x60] ss:$8 sps:$4 sm:$0xff]   ;;  %v492_v22 = vld [vmem:[#allocation5 + $0x74] ss:$8 sps:$4 sm:$0xff]   ;;  %v494_v26 = vld [vmem:[#allocation5 + $0x70] ss:$8 sps:$4 sm:$0xff]  }
  0x3f   :  { %v502_v23 = vld [vmem:[#allocation7 + $0x18] sm:$0xff]   ;;  %v503_v24 = vld [vmem:[#allocation7 + $0x60] sm:$0xff]   ;;  %v505_v27 = vld [vmem:[#allocation7 + $0x68] sm:$0xff]  }
  0x40   :  { %v504_v25 = vld [vmem:[#allocation7 + $0x20] sm:$0xff]   ;;  %v506_v28 = vld [vmem:[#allocation7 + $0x28] sm:$0xff]   ;;  %v61_v29 = vld [vmem:[#allocation2] sm:$0xf] }
  0x41   :  { %175 = vmatpush1.bf16.msra.mxu0 %v479_v6  ;;  %443 = vmatpush3.bf16.msra.mxu1 %v498_v14  ;;  %v507_v30 = vld [vmem:[#allocation7 + $0x70] sm:$0xff]   ;;  %v509_v32 = vld [vmem:[#allocation7 + $0x78] sm:$0xff]  }
  0x42   :  { %176 = vmatprep.subr.bf16.mxu0 %v480_v7  ;;  %444 = vmatprep.subr.bf16.mxu1 %v499_v15  ;;  %v508_v31 = vld [vmem:[#allocation7 + $0x30] sm:$0xff]   ;;  %v510_v33 = vld [vmem:[#allocation7 + $0x38] sm:$0xff]  }
  0x43   :  { %v78_v37 = vld [vmem:[%s700_s2] sm:$0x3]  ;;  %s613_s2 = smov [#allocation8]  }
  0x44   :  { %v83_v39 = vrot.slane %v78_v37, %v82_v36  ;;  %v87_v40 = vrot.slane %v78_v37, %v86_v38  ;;  %v423_v52 = vld [vmem:[%s702_s4] ss:$0 sm:$0xff]  ;;  %s397_s9 = sshll.u32 %s613_s2, 4  ;;  %s398_s9 = int_to_ptr.vmem [resolvable:$true] %s397_s9 }
  0x45   :  { %177 = vmatpush1.bf16.msra.mxu0 %v482_v8  ;;  %445 = vmatpush3.bf16.msra.mxu1 %v500_v18  ;;  %s577_s10 = scalar_lea.vmem %s398_s9, 128  ;;  %p582_p11 = scmp.lt.s32.totalorder %s398_s9, %s398_s9 }
  0x46   :  { %178 = vmatprep.subr.bf16.mxu0 %v483_v9  ;;  %446 = vmatprep.subr.bf16.mxu1 %v501_v19  ;;  %p578_p10 = scmp.ne.s32.totalorder %s398_s9, %s577_s10  ;;  %p583_p12 = scmp.lt.s32.totalorder %s577_s10, %s577_s10 }
  0x48   :  { %p584_p13 = por %p583_p12, %p582_p11 }
  0x49   :  { %179 = vmatpush1.bf16.msra.mxu0 %v485_v12  ;;  %447 = vmatpush3.bf16.msra.mxu1 %v502_v23 }
  0x4a   :  { %180 = vmatprep.subr.bf16.mxu0 %v486_v16  ;;  %448 = vmatprep.subr.bf16.mxu1 %v503_v24  ;;  %p585_p0 = pnand %p584_p13, %p578_p10 }
  0x4d   :  { %181 = vmatpush1.bf16.msra.mxu0 %v488_v17  ;;  %449 = vmatpush3.bf16.msra.mxu1 %v504_v25 }
  0x4e   :  { %182 = vmatprep.subr.bf16.mxu0 %v489_v20  ;;  %450 = vmatprep.subr.bf16.mxu1 %v505_v27 }
  0x51   :  { %183 = vmatpush1.bf16.msra.mxu0 %v491_v21  ;;  %451 = vmatpush3.bf16.msra.mxu1 %v506_v28 }
  0x52   :  { %184 = vmatprep.subr.bf16.mxu0 %v492_v22  ;;  %452 = vmatprep.subr.bf16.mxu1 %v507_v30 }
  0x55   :  { %185 = vmatpush1.bf16.msra.mxu0 %v494_v26  ;;  %453 = vmatpush3.bf16.msra.mxu1 %v508_v31 }
  0x56   :  { %454 = vmatprep.subr.bf16.mxu1 %v509_v32 }
  0x58   :  { %203 = vmatmul.mubr.bf16.vlgmr.msra.gmra.mrb[0].mxu0 %v61_v29 }
  0x59   :  { %455 = vmatpush3.bf16.msra.mxu1 %v510_v33 }
 0x12b   :  { %v204_v41 = vpop.f32.mrb[0].mxu0 }
 0x12c   :  { %v205_v42 = vadd.f32 %v204_v41, %v83_v39  ;;  %v206_v43 = vpop.f32.mrb[1].mxu0 }
 0x12d   :  { %v207_v44 = vadd.f32 %v206_v43, %v87_v40  ;;  %v208_v45 = vpop.f32.mrb[2].mxu0 }
 0x12e   :  { %v211_v46 = vmax.f32 %v205_v42, 0.0  ;;  %v209_v47 = vpop.f32.mrb[3].mxu0 }
 0x12f   :  { %v212_v48 = vmax.f32 %v207_v44, 0.0 }
 0x130   :  { %v213_v50 = vpack.c.bf16 %v211_v46, %v211_v46 }
 0x131   :  { %v214_v49 = vpack.c.bf16 %v212_v48, %v212_v48 }
 0x133   :  { %382 = vmatprep.mubr.bf16.mxu1 %v214_v49 }
 0x134   :  { %383 = vmatmul.mubr.bf16.vlgmr.msra.gmra.mrb[0].mxu1 %v213_v50 }
 0x207   :  { %v456_v51 = vpop.f32.mrb[0].mxu1 }
 0x208   :  { %v457_v53 = vpop.f32.mrb[1].mxu1 }
 0x209   :  { %v458_v54 = vadd.f32 %v457_v53, %v456_v51  ;;  %v459_v55 = vpop.f32.mrb[2].mxu1 }
 0x20a   :  { %v460_v56 = vpop.f32.mrb[3].mxu1 }
 0x20b   :  { %v385_v57 = vadd.f32 %v458_v54, %v423_v52 }
 0x20d   :  { %390 = vst [vmem:[#allocation8] sm:$0xff] %v385_v57 }
 0x20e   :  { %588 = shalt.err (!%p585_p0)
}
 0x20f   :  { %s589_s4 = scalar_lea.hbm %s703_s5, 128 }
 0x210   :  { %p590_p1 = scmp.ne.s32.totalorder %s703_s5, %s589_s4  ;;  %p593_p2 = scmp.lt.u32.totalorder %s589_s4, %s703_s5 }
 0x212   :  { %p595_p3 = pnand %p593_p2, %p590_p1 }
 0x214   :  { %598 = shalt.err (!%p595_p3)
}
 0x215   :  { %400 = dma.vmem_to_hbm [thread:$0]  %s398_s9, 128, %s703_s5, [#allocation4]  }
 0x216   :  { %603 = dma.done.wait [#allocation4], 128  }
 0x217   :  { %604 = vsyncadd [#allocation4], 4294967168 }
 0x218   :  { %404 = vsyncpa [#allocation3], 1 }
 0x219   :  { %405 = vsyncpa [#allocation6], 1 }
 0x21a   :  { %406 = vsyncpa [#allocation4], 1 }

</bundles_post_ra>
